<compile_context>
chip_gen: v7x
topology: tpu7x:2x2x1
jax: 0.10.0
libtpu: 0.0.40
codegen_flags: <defaults>
</compile_context>

<pallas_src>
import jax
import jax.numpy as jnp
from jax.experimental import pallas as pl
from jax.experimental.pallas import tpu as pltpu


def _round_up(x, m):
    return (x + m - 1) // m * m


def _pow2_tile(requested, upper):
    """Largest power-of-two multiple of 128 that is <= requested and <= upper."""
    t = 128
    while t * 2 <= min(requested, upper):
        t *= 2
    return t


def _vmem_limit_bytes():
    """~75% of physical VMEM, capped at 100 MiB (v5e/v6e ~96 MiB, v7x 48 MiB)."""
    try:
        cap = pltpu.get_tpu_info().vmem_capacity_bytes
    except Exception:
        cap = 64 * 1024 * 1024          # conservative fallback, safe on every chip
    return int(min(cap * 3 // 4, 100 * 1024 * 1024))


# ----------------------------------------------------------------------------- kernels
def _gcn_layer1_kernel(adj_ref, xw1_ref, b1_ref, w2_ref, h1w2_ref, acc_ref):
    """One (row-tile, k-tile) step of  H1W2 = relu(A @ XW1 + b1) @ W2  (bf16 out)."""
    k = pl.program_id(1)
    tk = adj_ref.shape[1]

    @pl.when(k == 0)
    def _init():
        acc_ref[...] = jnp.zeros_like(acc_ref)

    k0 = pl.multiple_of(k * tk, tk)                       # aligned row slice of XW1
    acc_ref[...] += jnp.dot(adj_ref[...], xw1_ref[pl.ds(k0, tk), :],
                            preferred_element_type=jnp.float32)

    @pl.when(k == pl.num_programs(1) - 1)
    def _epilogue():
        h = jnp.maximum(acc_ref[...] + b1_ref[...], 0.0)           # bias + ReLU (f32)
        h1w2 = jnp.dot(h.astype(jnp.bfloat16), w2_ref[...],
                       preferred_element_type=jnp.float32)
        h1w2_ref[...] = h1w2.astype(jnp.bfloat16)


def _gcn_layer2_kernel(adj_ref, h1w2_ref, b2_ref, out_ref, acc_ref):
    """One (row-tile, k-tile) step of  OUT = A @ H1W2 + b2  (f32 out)."""
    k = pl.program_id(1)
    tk = adj_ref.shape[1]

    @pl.when(k == 0)
    def _init():
        acc_ref[...] = jnp.zeros_like(acc_ref)

    k0 = pl.multiple_of(k * tk, tk)
    acc_ref[...] += jnp.dot(adj_ref[...], h1w2_ref[pl.ds(k0, tk), :],
                            preferred_element_type=jnp.float32)

    @pl.when(k == pl.num_programs(1) - 1)
    def _epilogue():
        out_ref[...] = acc_ref[...] + b2_ref[...]


# ----------------------------------------------------------------------------- wrapper
def _gcn_pallas(adj_p, xw1_p, b1_p, w2_p, b2_p, *, tm, tk, n_pad, hp, cp, buffer_hints):
    n_row_tiles = n_pad // tm
    n_k_tiles = n_pad // tk
    grid = (n_row_tiles, n_k_tiles)

    cparams = pltpu.CompilerParams(
        dimension_semantics=("parallel", "arbitrary"),     # rows megacore-parallel, k seq.
        vmem_limit_bytes=_vmem_limit_bytes())

    def spec(shape, index_map, buffers):
        """BlockSpec with an optional buffer-count hint (graceful fallback)."""
        if buffer_hints and buffers is not None:
            try:
                return pl.BlockSpec(shape, index_map,
                                    pipeline_mode=pl.Buffered(buffers))
            except Exception:
                pass
        return pl.BlockSpec(shape, index_map)

    adj_spec = spec((tm, tk), lambda i, k: (i, k), 3)      # streamed, triple-buffered

    bf = jnp.bfloat16
    elt = 2                                                # bf16 bytes

    # ---- layer 1:  H1W2 = relu(A @ XW1 + b1) @ W2  (bf16) ----
    cost1 = pl.CostEstimate(
        flops=2 * n_pad * n_pad * hp + 2 * n_pad * hp * cp,
        transcendentals=0,
        bytes_accessed=n_pad * n_pad * elt + n_pad * hp * elt + n_pad * cp * elt)
    h1w2 = pl.pallas_call(
        _gcn_layer1_kernel,
        out_shape=jax.ShapeDtypeStruct((n_pad, cp), bf),
        grid=grid,
        in_specs=[
            adj_spec,
            spec((n_pad, hp), lambda i, k: (0, 0), 1),     # XW1  (VMEM-resident)
            spec((1, hp), lambda i, k: (0, 0), 1),         # b1   (resident)
            spec((hp, cp), lambda i, k: (0, 0), 1),        # W2   (resident)
        ],
        out_specs=pl.BlockSpec((tm, cp), lambda i, k: (i, 0)),
        scratch_shapes=[pltpu.VMEM((tm, hp), jnp.float32)],
        compiler_params=cparams,
        cost_estimate=cost1,
    )(adj_p, xw1_p, b1_p, w2_p)

    # ---- layer 2:  OUT = A @ H1W2 + b2  (f32) ----
    cost2 = pl.CostEstimate(
        flops=2 * n_pad * n_pad * cp,
        transcendentals=0,
        bytes_accessed=n_pad * n_pad * elt + n_pad * cp * elt + n_pad * cp * 4)
    out = pl.pallas_call(
        _gcn_layer2_kernel,
        out_shape=jax.ShapeDtypeStruct((n_pad, cp), jnp.float32),
        grid=grid,
        in_specs=[
            adj_spec,
            spec((n_pad, cp), lambda i, k: (0, 0), 1),     # H1W2 (VMEM-resident)
            spec((1, cp), lambda i, k: (0, 0), 1),         # b2   (resident)
        ],
        out_specs=pl.BlockSpec((tm, cp), lambda i, k: (i, 0)),
        scratch_shapes=[pltpu.VMEM((tm, cp), jnp.float32)],
        compiler_params=cparams,
        cost_estimate=cost2,
    )(adj_p, h1w2, b2_p)

    return out


def gcn_forward(in_feat, adj_norm, params, nid=None, *, row_tile=256, k_tile=2048):
    """Mirrors GCN.forward(in_feat, g, edge_weight=None, nid=None) with dense A_hat."""
    n = adj_norm.shape[0]
    f_in = in_feat.shape[1]
    h_f = params["w1"].shape[1]
    n_cls = params["w2"].shape[1]

    lane = 128
    hp = _round_up(h_f, lane)                              # padded hidden (lane-dense)
    cp = _round_up(n_cls, lane)                            # padded classes (lane-dense)

    n128 = _round_up(n, lane)
    tm = _pow2_tile(max(row_tile, lane), n128)             # row tile (pow2 * 128)
    tk = _pow2_tile(max(k_tile, lane), n128)               # contraction tile (pow2 * 128)
    n_pad = _round_up(n, max(tm, tk))                      # divisible by both tm and tk

    bf = jnp.bfloat16
    f32 = jnp.float32

    # Re-associated layer 1: XW1 = X @ W1 precomputed in f32 (tiny), stored bf16.
    xw1 = in_feat.astype(f32) @ params["w1"].astype(f32)
    xw1_p = jnp.pad(xw1, ((0, n_pad - n), (0, hp - h_f))).astype(bf)

    adj_p = jnp.pad(adj_norm.astype(bf), ((0, n_pad - n), (0, n_pad - n)))
    w2_p = jnp.pad(params["w2"].astype(bf), ((0, hp - h_f), (0, cp - n_cls)))
    b1_p = jnp.pad(params["b1"].astype(f32).reshape(1, -1), ((0, 0), (0, hp - h_f)))
    b2_p = jnp.pad(params["b2"].astype(f32).reshape(1, -1), ((0, 0), (0, cp - n_cls)))

    try:
        out = _gcn_pallas(adj_p, xw1_p, b1_p, w2_p, b2_p,
                          tm=tm, tk=tk, n_pad=n_pad, hp=hp, cp=cp, buffer_hints=True)
    except Exception:
        # pipeline_mode / pl.Buffered hints unsupported on this jax: plain BlockSpecs.
        out = _gcn_pallas(adj_p, xw1_p, b1_p, w2_p, b2_p,
                          tm=tm, tk=tk, n_pad=n_pad, hp=hp, cp=cp, buffer_hints=False)

    out = out[:n, :n_cls]                                  # strip padding (glue)
    if nid is None:
        return out
    return out[nid:nid + 1]                                # glue: slice final logits


def build_normalized_adjacency(adj, edge_weight=None):
    """A_hat = D^{-1/2} (A * w) D^{-1/2}  (DGL GraphConv norm='both')."""
    a = adj.astype(jnp.float32)
    if edge_weight is not None:
        a = a * edge_weight
    deg = jnp.sum(a, axis=1)
    d_inv_sqrt = jnp.where(deg > 0, 1.0 / jnp.sqrt(deg), 0.0)
    return a * d_inv_sqrt[:, None] * d_inv_sqrt[None, :]


if __name__ == "__main__":
    key = jax.random.PRNGKey(0)
    N, IN_FEATS, H_FEATS, NUM_CLASSES = 300, 8, 16, 4
    k_adj, k_x, k_w1, k_w2, k_b1, k_b2 = jax.random.split(key, 6)

    # Synthetic undirected graph with self-loops (avoids zero in-degree).
    upper = (jax.random.uniform(k_adj, (N, N)) < 0.15).astype(jnp.float32)
    adj = jnp.clip(upper + upper.T + jnp.eye(N, dtype=jnp.float32), 0.0, 1.0)
    adj_norm = build_normalized_adjacency(adj)

    x = jax.random.normal(k_x, (N, IN_FEATS), dtype=jnp.float32)

    def glorot(k, shape):
        limit = jnp.sqrt(6.0 / (shape[0] + shape[1]))
        return jax.random.uniform(k, shape, jnp.float32, -limit, limit)

    params = {
        "w1": glorot(k_w1, (IN_FEATS, H_FEATS)),
        "b1": 0.1 * jax.random.normal(k_b1, (H_FEATS,), dtype=jnp.float32),
        "w2": glorot(k_w2, (H_FEATS, NUM_CLASSES)),
        "b2": 0.1 * jax.random.normal(k_b2, (NUM_CLASSES,), dtype=jnp.float32),
    }

    # Default tiles (2x2 grid per layer at this N) and small tiles (3x3 grid: exercises
    # the k-accumulation loop and multiple row tiles), plus the nid-slice path.
    out_full = jax.block_until_ready(gcn_forward(x, adj_norm, params))
    out_tiled = jax.block_until_ready(
        gcn_forward(x, adj_norm, params, row_tile=128, k_tile=128))
    out_nid = jax.block_until_ready(
        gcn_forward(x, adj_norm, params, nid=7, row_tile=128, k_tile=128))

    assert out_full.shape == (N, NUM_CLASSES)
    assert out_tiled.shape == (N, NUM_CLASSES)
    assert out_nid.shape == (1, NUM_CLASSES)

    # Pure-JAX f32 reference (kernel uses bf16 operands -> loose tolerance).
    ref = (adj_norm @ jnp.maximum(adj_norm @ x @ params["w1"] + params["b1"], 0.0)
           @ params["w2"] + params["b2"])
    assert jnp.allclose(out_full, ref, atol=5e-2), "mismatch vs reference"
    assert jnp.allclose(out_tiled, ref, atol=5e-2), "tiled mismatch vs reference"
    assert jnp.allclose(out_nid, ref[7:8], atol=5e-2), "nid slice mismatch"

    print("KERNEL_OK")
</pallas_src>

<mosaic_0001>
module attributes {stable_mosaic.version = 11 : i64} {
  func.func @_gcn_layer1_kernel(%arg0: i32, %arg1: i32, %arg2: memref<256x256xbf16, #tpu.memory_space<vmem>>, %arg3: memref<512x128xbf16, #tpu.memory_space<vmem>>, %arg4: memref<1x128xf32, #tpu.memory_space<vmem>>, %arg5: memref<128x128xbf16, #tpu.memory_space<vmem>>, %arg6: memref<256x128xbf16, #tpu.memory_space<vmem>>, %arg7: memref<256x128xf32, #tpu.memory_space<vmem>>) attributes {dimension_semantics = [#tpu.dimension_semantics<parallel>, #tpu.dimension_semantics<arbitrary>], iteration_bounds = array<i64: 2, 2>, scalar_prefetch = 0 : i64, scratch_operands = 1 : i64, tpu.core_type = #tpu.core_type<tc>, window_params = [{transform_indices = @transform_0, window_bounds = array<i64: 256, 256>}, {pipeline_mode = #tpu.pipeline_mode<synchronous>, transform_indices = @transform_1, window_bounds = array<i64: 512, 128>}, {pipeline_mode = #tpu.pipeline_mode<synchronous>, transform_indices = @transform_2, window_bounds = array<i64: 1, 128>}, {pipeline_mode = #tpu.pipeline_mode<synchronous>, transform_indices = @transform_3, window_bounds = array<i64: 128, 128>}, {transform_indices = @transform_4, window_bounds = array<i64: 256, 128>}]} {
    %c0_i32 = arith.constant 0 : i32
    %0 = arith.cmpi eq, %arg1, %c0_i32 : i32
    %1 = arith.extui %0 : i1 to i32
    %c0_i32_0 = arith.constant 0 : i32
    %2 = arith.cmpi ne, %1, %c0_i32_0 : i32
    scf.if %2 {
      %cst_8 = arith.constant 0.000000e+00 : f32
      %15 = vector.broadcast %cst_8 : f32 to vector<256x128xf32>
      %c0_9 = arith.constant 0 : index
      %c0_10 = arith.constant 0 : index
      %16 = vector.load %arg7[%c0_9, %c0_10] : memref<256x128xf32, #tpu.memory_space<vmem>>, vector<256x128xf32>
      tpu.vector_store %arg7[%c0_9, %c0_10], %15 {strides = array<i32>} : memref<256x128xf32, #tpu.memory_space<vmem>>, vector<256x128xf32>,
    } else {
    }
    %c256_i32 = arith.constant 256 : i32
    %3 = arith.muli %arg1, %c256_i32 : i32
    %4 = tpu.assume_multiple %3, 256 : i32
    %c0 = arith.constant 0 : index
    %c0_1 = arith.constant 0 : index
    %5 = vector.load %arg7[%c0, %c0_1] : memref<256x128xf32, #tpu.memory_space<vmem>>, vector<256x128xf32>
    %c0_2 = arith.constant 0 : index
    %c0_3 = arith.constant 0 : index
    %6 = vector.load %arg2[%c0_2, %c0_3] : memref<256x256xbf16, #tpu.memory_space<vmem>>, vector<256x256xbf16>
    %7 = arith.index_cast %4 : i32 to index
    %c0_4 = arith.constant 0 : index
    %8 = vector.load %arg3[%7, %c0_4] : memref<512x128xbf16, #tpu.memory_space<vmem>>, vector<256x128xbf16>
    %cst = arith.constant dense<0.000000e+00> : vector<256x128xf32>
    %9 = tpu.matmul %6, %8, %cst {dimension_numbers = #tpu.dot_dimension_numbers<[1], [0], [0], [1], [0, 0, 1, 1], [], []>} : vector<256x256xbf16>, vector<256x128xbf16>, vector<256x128xf32> -> vector<256x128xf32>
    %10 = arith.addf %5, %9 : vector<256x128xf32>
    %c0_5 = arith.constant 0 : index
    %c0_6 = arith.constant 0 : index
    %11 = vector.load %arg7[%c0_5, %c0_6] : memref<256x128xf32, #tpu.memory_space<vmem>>, vector<256x128xf32>
    tpu.vector_store %arg7[%c0_5, %c0_6], %10 {strides = array<i32>} : memref<256x128xf32, #tpu.memory_space<vmem>>, vector<256x128xf32>,
    %c1_i32 = arith.constant 1 : i32
    %12 = arith.cmpi eq, %arg1, %c1_i32 : i32
    %13 = arith.extui %12 : i1 to i32
    %c0_i32_7 = arith.constant 0 : i32
    %14 = arith.cmpi ne, %13, %c0_i32_7 : i32
    scf.if %14 {
      %c0_8 = arith.constant 0 : index
      %c0_9 = arith.constant 0 : index
      %15 = vector.load %arg7[%c0_8, %c0_9] : memref<256x128xf32, #tpu.memory_space<vmem>>, vector<256x128xf32>
      %c0_10 = arith.constant 0 : index
      %c0_11 = arith.constant 0 : index
      %16 = vector.load %arg4[%c0_10, %c0_11] : memref<1x128xf32, #tpu.memory_space<vmem>>, vector<1x128xf32>
      %17 = vector.broadcast %16 : vector<1x128xf32> to vector<256x128xf32>
      %18 = arith.addf %15, %17 : vector<256x128xf32>
      %cst_12 = arith.constant 0.000000e+00 : f32
      %19 = vector.broadcast %cst_12 : f32 to vector<256x128xf32>
      %20 = arith.maximumf %18, %19 : vector<256x128xf32>
      %21 = arith.truncf %20 : vector<256x128xf32> to vector<256x128xbf16>
      %c0_13 = arith.constant 0 : index
      %c0_14 = arith.constant 0 : index
      %22 = vector.load %arg5[%c0_13, %c0_14] : memref<128x128xbf16, #tpu.memory_space<vmem>>, vector<128x128xbf16>
      %cst_15 = arith.constant dense<0.000000e+00> : vector<256x128xf32>
      %23 = tpu.matmul %21, %22, %cst_15 {dimension_numbers = #tpu.dot_dimension_numbers<[1], [0], [0], [1], [0, 0, 1, 1], [], []>} : vector<256x128xbf16>, vector<128x128xbf16>, vector<256x128xf32> -> vector<256x128xf32>
      %24 = arith.truncf %23 : vector<256x128xf32> to vector<256x128xbf16>
      %c0_16 = arith.constant 0 : index
      %c0_17 = arith.constant 0 : index
      %25 = vector.load %arg6[%c0_16, %c0_17] : memref<256x128xbf16, #tpu.memory_space<vmem>>, vector<256x128xbf16>
      tpu.vector_store %arg6[%c0_16, %c0_17], %24 {strides = array<i32>} : memref<256x128xbf16, #tpu.memory_space<vmem>>, vector<256x128xbf16>,
    } else {
    }
    return
  }
  func.func @transform_0(%arg0: i32, %arg1: i32) -> (i32, i32) {
    %c0_i32 = arith.constant 0 : i32
    return %arg0, %arg1 : i32, i32
  }
  func.func @transform_1(%arg0: i32, %arg1: i32) -> (i32, i32) {
    %c0_i32 = arith.constant 0 : i32
    %c0_i32_0 = arith.constant 0 : i32
    %c0_i32_1 = arith.constant 0 : i32
    return %c0_i32, %c0_i32_0 : i32, i32
  }
  func.func @transform_2(%arg0: i32, %arg1: i32) -> (i32, i32) {
    %c0_i32 = arith.constant 0 : i32
    %c0_i32_0 = arith.constant 0 : i32
    %c0_i32_1 = arith.constant 0 : i32
    return %c0_i32, %c0_i32_0 : i32, i32
  }
  func.func @transform_3(%arg0: i32, %arg1: i32) -> (i32, i32) {
    %c0_i32 = arith.constant 0 : i32
    %c0_i32_0 = arith.constant 0 : i32
    %c0_i32_1 = arith.constant 0 : i32
    return %c0_i32, %c0_i32_0 : i32, i32
  }
  func.func @transform_4(%arg0: i32, %arg1: i32) -> (i32, i32) {
    %c0_i32 = arith.constant 0 : i32
    %c0_i32_0 = arith.constant 0 : i32
    return %arg0, %c0_i32 : i32, i32
  }
}

</mosaic_0001>

<bundles_post_ra>
// kernel: tpu_custom_call.1
= control target key start
LH: loop header
LB: loop body
LE: loop exit
PB: predicated region body
PF: predicated region fallthrough
CT: control target
= control target key end

     0   :  { %s2846_s0 = inlined_call_operand.hbm [shape: bf16[512,512], index: 0, kind: input, shape index: {}]   ;;  %s2847_s1 = inlined_call_operand.hbm [shape: bf16[512,128], index: 1, kind: input, shape index: {}]   ;;  %s2848_s2 = inlined_call_operand.vmem [shape: f32[1,128], index: 2, kind: input, shape index: {}]   ;;  %s2849_s3 = inlined_call_operand.hbm [shape: bf16[128,128], index: 3, kind: input, shape index: {}]   ;;  %s2850_s4 = inlined_call_operand.hbm [shape: bf16[512,128], index: 4, kind: output, shape index: {}]  }
   0x1   :  { %2862 = sst [smem:[#allocation18_spill]] %s2847_s1 }
   0x2   :  { %2863 = sst [smem:[#allocation19_spill]] %s2849_s3 }
   0x3   :  { %2864 = sst [smem:[#allocation20_spill]] %s2850_s4 }
   0x4   :  { %9 = vsyncpa [#allocation4], 0 }
   0x5   :  { %11 = vsyncpa [#allocation4 + $0x1], 0 }
   0x6   :  { %12 = vsyncpa [#allocation7], 0 }
   0x7   :  { %13 = vsyncpa [#allocation5], 0 }
   0x8   :  { %15 = vsyncpa [#allocation5 + $0x1], 0  ;;  %s2427_s15 = smov 0   ;;  %s2429_s16 = smov 0  }
   0x9   :  { %s2431_s17 = smov 0   ;;  %s2433_s18 = smov 0  }
   0xa   :  { %s2435_s19 = smov 0   ;;  %s2437_s20 = smov 0  }
   0xb   :  { %s2439_s21 = smov 0   ;;  %s2441_s22 = smov 0  }
   0xc   :  { %s2443_s23 = smov 0   ;;  %s2445_s24 = smov 0  }
   0xd   :  { %s2447_s25 = smov 0  }
   0xe LB: > { %2865 = sst [smem:[#allocation13_spill]] %s2348_s15  ;;  %s1514_s26 = sadd.s32 4294967295, %s2388_s25   ;;  %s2388_s25 = sphi %s2447_s25, %s21_s25   ;;  %s2384_s24 = sphi %s2445_s24, %s2900_s24   ;;  %s2380_s23 = sphi %s2443_s23, %s2899_s23   ;;  %s2376_s22 = sphi %s2441_s22, %s2898_s22   ;;  %s2372_s21 = sphi %s2439_s21, %s2890_s21   ;;  %s2368_s20 = sphi %s2437_s20, %s2897_s20   ;;  %s2364_s19 = sphi %s2435_s19, %s2896_s19   ;;  %s2360_s18 = sphi %s2433_s18, %s2895_s18   ;;  %s2356_s17 = sphi %s2431_s17, %s2894_s17   ;;  %s2352_s16 = sphi %s2429_s16, %s2893_s16   ;;  %s2348_s15 = sphi %s2427_s15, %s2892_s15  }
   0xf   : > { %2866 = sst [smem:[#allocation14_spill]] %s2380_s23  ;;  %s1515_s27 = sadd.s32 4294967294, %s2388_s25  }
  0x10   : > { %2867 = sst [smem:[#allocation15_spill]] %s2388_s25  ;;  %p49_p0 = scmp.ne.s32.totalorder %s2368_s20, %s2364_s19 }
  0x11   : > { %p50_p1 = scmp.eq.s32.totalorder %s2388_s25, 0  ;;  %p55_p2 = scmp.ne.s32.totalorder %s2364_s19, %s2360_s18 }
  0x12   : > { %p2487_p3 = scmp.eq.s32.totalorder %s1514_s26, 0  ;;  %p141_p5 = scmp.ne.s32.totalorder %s2356_s17, %s2352_s16 }
  0x13   : > { %p2492_p4 = por %p50_p1, %p49_p0  ;;  %p142_p7 = scmp.eq.s32.totalorder %s1514_s26, 3 }
  0x14   : > { %s2868_s29 = scalar_select %p2487_p3, 1, 0 }
  0x15   : > { %p2500_p6 = por %p2487_p3, %p55_p2  ;;  %p147_p8 = scmp.ne.s32.totalorder %s2352_s16, %s2348_s15 }
  0x16   : > { %p148_p9 = scmp.eq.s32.totalorder %s1515_s27, 3  ;;  %p2506_p10 = por %p142_p7, %p141_p5 }
  0x17   : > { %s2870_s6 = scalar_select %p2500_p6, 1, 0 }
  0x18   : > { %s2871_s7 = scalar_select %p2506_p10, 1, 0 }
  0x19   : > { %p1516_p11 = scmp.ge.s32.totalorder %s2388_s25, 1  ;;  %p2511_p12 = por %p148_p9, %p147_p8 }
  0x1a   : > { %p155_p13 = scmp.lt.s32.totalorder %s2388_s25, 5  ;;  %s2390_s10 = smov [#allocation6]  }
  0x1b   : > { %s2872_s8 = scalar_select %p2511_p12, 1, 0 }
  0x1c   : > { %p2516_p0 = pnand %p1516_p11, %p155_p13  ;;  %s167_s11 = sshll.u32 %s2390_s10, 4  ;;  %s2520_s11 = int_to_ptr.vmem [resolvable:$true] %s167_s11 }
  0x1d   : > { %2873 = sst [smem:[#allocation16_spill]] %s2872_s8  ;;  %p2002_p2 = scmp.lt.s32.totalorder %s2388_s25, 4 }
  0x1e   : > { %p1985_p1 = pneg %p2516_p0  ;;  %s2391_s14 = smov [#allocation8]  }
  0x1f   : > { %p2533_p7 = pnand %p2002_p2, %p2492_p4  ;;  %s183_s18 = sshll.u32 %s2391_s14, 4  ;;  %s2537_s18 = int_to_ptr.vmem [resolvable:$true] %s183_s18 }
  0x20   : > { %p2527_p5 = pnand %p1985_p1, %p2487_p3  ;;  %s2877_s1 = sld [smem:[#allocation18_spill]] }
  0x22   : > { %p2178_p9 = pneg %p2527_p5 }
  0x26   : > { %s2176_s10 = scalar_lea.hbm %s2877_s1, 4096 }
  0x27   : > { %p2177_p8 = scmp.ne.s32.totalorder %s2877_s1, %s2176_s10  ;;  %p2183_p13 = scmp.lt.u32.totalorder %s2176_s10, %s2877_s1 }
  0x29   : > { %p2179_p4 = pnand %p2178_p9, %p2177_p8 }
  0x2b   : > { %p2180_p11 = pneg %p2179_p4 }
  0x2d   : > { %p2185_p1 = pnand %p2183_p13, %p2180_p11 }
  0x2f   : > { %2188 = shalt.err (!%p2185_p1)
}
  0x30   : > { %s2189_s14 = scalar_lea.vmem %s2520_s11, 4096  ;;  %p2197_p3 = scmp.lt.s32.totalorder %s2520_s11, %s2520_s11 }
  0x31   : > { %p2190_p2 = scmp.ne.s32.totalorder %s2520_s11, %s2189_s14  ;;  %p2198_p8 = scmp.lt.s32.totalorder %s2189_s14, %s2189_s14 }
  0x33   : > { %p2192_p12 = pnand %p2190_p2, %p2178_p9  ;;  %p2199_p4 = por %p2198_p8, %p2197_p3 }
  0x35   : > { %p2193_p10 = pneg %p2192_p12 }
  0x37   : > { %p2200_p6 = pnand %p2199_p4, %p2193_p10 }
  0x39   : > { %2203 = shalt.err (!%p2200_p6)
}
  0x3a   : > { %s2392_s28 = smov 64   ;;  %s2393_s30 = smov 4  }
  0x3b   : > { %1988 = dma.hbm_to_vmem [thread:$0]  (!%p2527_p5), %s2877_s1, 4096, %s2520_s11, [#allocation7], %s2392_s28, %s2392_s28, %s2393_s30  }
  0x3c   : > { %s2878_s3 = sld [smem:[#allocation19_spill]] }
  0x42   : > { %s2204_s5 = scalar_lea.hbm %s2878_s3, 1024 }
  0x43   : > { %p2205_p3 = scmp.ne.s32.totalorder %s2878_s3, %s2204_s5  ;;  %p2211_p12 = scmp.lt.u32.totalorder %s2204_s5, %s2878_s3 }
  0x45   : > { %p2207_p6 = pnand %p2205_p3, %p2178_p9 }
  0x47   : > { %p2208_p10 = pneg %p2207_p6 }
  0x49   : > { %p2213_p11 = pnand %p2211_p12, %p2208_p10 }
  0x4b   : > { %2216 = shalt.err (!%p2213_p11)
}
  0x4c   : > { %s2217_s11 = scalar_lea.vmem %s2537_s18, 1024  ;;  %p2225_p8 = scmp.lt.s32.totalorder %s2537_s18, %s2537_s18 }
  0x4d   : > { %p2218_p13 = scmp.ne.s32.totalorder %s2537_s18, %s2217_s11  ;;  %p2226_p4 = scmp.lt.s32.totalorder %s2217_s11, %s2217_s11 }
  0x4f   : > { %p2220_p1 = pnand %p2218_p13, %p2178_p9  ;;  %p2227_p3 = por %p2226_p4, %p2225_p8 }
  0x51   : > { %p2221_p2 = pneg %p2220_p1 }
  0x53   : > { %p2228_p6 = pnand %p2227_p3, %p2221_p2 }
  0x55   : > { %2231 = shalt.err (!%p2228_p6)
}
  0x56   : > { %1991 = dma.hbm_to_vmem [thread:$0]  (!%p2527_p5), %s2878_s3, 1024, %s2537_s18, [#allocation7], %s2392_s28, %s2392_s28, %s2393_s30  }
  0x57   : > { %s30_s25 = sadd.s32 1, %s2380_s23  ;;  %s33_s8 = sadd.s32 1, %s2384_s24 }
  0x58   : > { %p31_p9 = scmp.ge.s32.totalorder %s30_s25, 2  ;;  %s197_s26 = sand.u32 1, %s2368_s20  }
  0x59   : > { %s1522_s27 = sshll.u32 %s2380_s23, 1  ;;  %s1520_s10 = sshll.u32 %s197_s26, 8 }
  0x5a   : > { %s2902_s25 = smov (%p31_p9, %s30_s25), 0  ;;  %s2904_s8 = smov (!%p31_p9, %s33_s8), %s2384_s24 }
  0x5b   : > { %2879 = sst [smem:[#allocation17_spill]] %s2902_s25  ;;  %s38_s12 = ssub.s32 %s2380_s23, %s2902_s25 }
  0x5c   : > { %p35_p10 = scmp.ge.s32.totalorder %s2904_s8, 2  ;;  %s1628_s5 = sshll.u32 %s2384_s24, 7 }
  0x5d   : > { %s208_s18 = sadd.s32 %s1628_s5, %s1522_s27  ;;  %s201_s28 = scalar_lea.vmem [#allocation3], %s1520_s10 }
  0x5e   : > { %s2906_s8 = smov (%p35_p10, %s2904_s8), 0  ;;  %s211_s30 = sshll.u32 %s201_s28, 4  ;;  %s2620_s30 = int_to_ptr.vmem [resolvable:$true] %s211_s30 }
  0x5f   : > { %s37_s14 = ssub.s32 %s2384_s24, %s2906_s8  ;;  %s1524_s11 = sshll.u32 %s208_s18, 6 }
  0x60   : > { %s39_s4 = sor.u32 %s38_s12, %s37_s14  ;;  %p129_p5 = scmp.eq.s32.totalorder %s37_s14, 0 }
  0x61   : > { %p40_p12 = scmp.eq.s32.totalorder %s39_s4, 0  ;;  %s2608_s3 = scalar_lea.hbm %s2846_s0, %s1524_s11 }
  0x62   : > { %s2880_s25 = sadd.s32 1, %s2356_s17  ;;  %s2881_s27 = sadd.s32 1, %s2368_s20 }
  0x63   : > { %s2613_s23 = scalar_select %p129_p5, %s2356_s17, %s2880_s25  }
  0x64   : > { %s2618_s10 = scalar_select %p40_p12, %s2368_s20, %s2881_s27  }
  0x65   : > { %s2622_s12 = scalar_lea.sflag [#allocation4], %s197_s26  ;;  %s2232_s5 = scalar_lea.hbm %s2608_s3, 4096 }
  0x66   : > { %p2233_p11 = scmp.ne.s32.totalorder %s2608_s3, %s2232_s5  ;;  %p2234_p13 = pneg %p2533_p7 }
  0x67   : > { %s2237_s25 = scalar_lea.hbm %s2846_s0, 16384  ;;  %p2238_p8 = scmp.lt.u32.totalorder %s2608_s3, %s2846_s0 }
  0x68   : > { %p2235_p1 = pnand %p2234_p13, %p2233_p11  ;;  %p2239_p4 = scmp.lt.u32.totalorder %s2237_s25, %s2232_s5 }
  0x69   : > { %p2241_p6 = scmp.lt.u32.totalorder %s2232_s5, %s2608_s3 }
  0x6a   : > { %p2236_p2 = pneg %p2235_p1  ;;  %p2240_p3 = por %p2239_p4, %p2238_p8 }
  0x6c   : > { %p2242_p9 = por %p2241_p6, %p2240_p3 }
  0x6e   : > { %p2243_p10 = pnand %p2242_p9, %p2236_p2 }
  0x70   : > { %2246 = shalt.err (!%p2243_p10)
}
  0x71   : > { %s2247_s26 = scalar_lea.vmem %s2620_s30, 4096  ;;  %s2394_s11 = smov [#allocation3]  }
  0x72   : > { %p2248_p5 = scmp.ne.s32.totalorder %s2620_s30, %s2247_s26  ;;  %s2252_s4 = sshll.u32 %s2394_s11, 4  ;;  %s2253_s4 = int_to_ptr.vmem [resolvable:$false] %s2252_s4 }
  0x73   : > { %s2254_s15 = scalar_lea.vmem %s2253_s4, 8192  ;;  %p2255_p1 = scmp.lt.s32.totalorder %s2620_s30, %s2253_s4 }
  0x74   : > { %p2250_p12 = pnand %p2248_p5, %p2234_p13  ;;  %p2256_p8 = scmp.lt.s32.totalorder %s2254_s15, %s2247_s26 }
  0x76   : > { %p2251_p11 = pneg %p2250_p12  ;;  %p2257_p4 = por %p2256_p8, %p2255_p1 }
  0x78   : > { %p2258_p3 = pnand %p2257_p4, %p2251_p11 }
  0x7a   : > { %2261 = shalt.err (!%p2258_p3)
}
  0x7b   : > { %s2395_s27 = smov 256   ;;  %s2396_s5 = smov 128  }
  0x7c   : > { %s2397_s1 = smov 8   ;;  %223 = sbr.rel (%p2516_p0) target bundleno = 742 (0x2e6), region = 36 }
  0x7d   : > { %1995 = dma.hbm_to_vmem [thread:$0]  (!%p2533_p7), %s2608_s3, 4096, %s2620_s30, %s2622_s12, %s2395_s27, %s2396_s5, %s2397_s1  }
  0x7e   : > { %s225_s18 = sand.u32 (!%p2516_p0), 1, %s2364_s19   ;;  %p2882_p13 = scmp.ne.s32.totalorder (!%p2516_p0), %s2870_s6, 0 }
  0x7f   : > { %s1526_s25 = sshll.u32 (!%p2516_p0), %s225_s18, 8  ;;  %s226_s28 = scalar_lea.sflag (!%p2516_p0), [#allocation4], %s225_s18 }
  0x80   : > { %s2653_s14 = scalar_lea.vmem (!%p2516_p0), [#allocation3], %s1526_s25 }
  0x83   : > { %2335 = dma.done.wait (%p2882_p13), %s226_s28, 4096  }
  0x84   : > { %2337 = vsyncadd (%p2882_p13), %s226_s28, 4294963200  ;;  %p2883_p2 = scmp.ne.s32.totalorder %s2868_s29, 0 }
  0x86   : > { %2339 = dma.done.wait (%p2883_p2), [#allocation7], 5120  }
  0x87   : > { %2341 = vsyncadd (%p2883_p2), [#allocation7], 4294962176  ;;  %s259_s3 = sand.u32 1, %s2352_s16   ;;  %p1530_p0 = scmp.ne.s32.totalorder %s2372_s21, 0 }
  0x88   : > { %s1529_s9 = sshll.u32 %s259_s3, 7  ;;  %v2398_v0 = vmov (!%p1530_p0), 0.0  }
  0x89   : > { %s2666_s13 = scalar_lea.vmem [#allocation9], %s1529_s9  ;;  %269 = sbr.rel (%p1530_p0) target bundleno = 153 (0x99), region = 52  ;;  %270 = vst [vmem:[#allocation2] sm:$0xff] (!%p1530_p0), %v2398_v0  ;;  %271 = vst [vmem:[#allocation2 + $0x8] sm:$0xff] (!%p1530_p0), %v2398_v0 }
  0x8a   : > { %272 = vst [vmem:[#allocation2 + $0x10] sm:$0xff] (!%p1530_p0), %v2398_v0  ;;  %273 = vst [vmem:[#allocation2 + $0x18] sm:$0xff] (!%p1530_p0), %v2398_v0 }
  0x8b   : > { %274 = vst [vmem:[#allocation2 + $0x20] sm:$0xff] (!%p1530_p0), %v2398_v0  ;;  %275 = vst [vmem:[#allocation2 + $0x28] sm:$0xff] (!%p1530_p0), %v2398_v0 }
  0x8c   : > { %276 = vst [vmem:[#allocation2 + $0x30] sm:$0xff] (!%p1530_p0), %v2398_v0  ;;  %277 = vst [vmem:[#allocation2 + $0x38] sm:$0xff] (!%p1530_p0), %v2398_v0 }
  0x8d   : > { %278 = vst [vmem:[#allocation2 + $0x40] sm:$0xff] (!%p1530_p0), %v2398_v0  ;;  %279 = vst [vmem:[#allocation2 + $0x48] sm:$0xff] (!%p1530_p0), %v2398_v0 }
  0x8e   : > { %280 = vst [vmem:[#allocation2 + $0x50] sm:$0xff] (!%p1530_p0), %v2398_v0  ;;  %281 = vst [vmem:[#allocation2 + $0x58] sm:$0xff] (!%p1530_p0), %v2398_v0 }
  0x8f   : > { %282 = vst [vmem:[#allocation2 + $0x60] sm:$0xff] (!%p1530_p0), %v2398_v0  ;;  %283 = vst [vmem:[#allocation2 + $0x68] sm:$0xff] (!%p1530_p0), %v2398_v0 }
  0x90   : > { %284 = vst [vmem:[#allocation2 + $0x70] sm:$0xff] %v2398_v0  ;;  %285 = vst [vmem:[#allocation2 + $0x78] sm:$0xff] %v2398_v0 }
  0x91   : > { %286 = vst [vmem:[#allocation2 + $0x80] sm:$0xff] %v2398_v0  ;;  %287 = vst [vmem:[#allocation2 + $0x88] sm:$0xff] %v2398_v0 }
  0x92   : > { %288 = vst [vmem:[#allocation2 + $0x90] sm:$0xff] %v2398_v0  ;;  %289 = vst [vmem:[#allocation2 + $0x98] sm:$0xff] %v2398_v0 }
  0x93   : > { %290 = vst [vmem:[#allocation2 + $0xa0] sm:$0xff] %v2398_v0  ;;  %291 = vst [vmem:[#allocation2 + $0xa8] sm:$0xff] %v2398_v0 }
  0x94   : > { %292 = vst [vmem:[#allocation2 + $0xb0] sm:$0xff] %v2398_v0  ;;  %293 = vst [vmem:[#allocation2 + $0xb8] sm:$0xff] %v2398_v0 }
  0x95   : > { %294 = vst [vmem:[#allocation2 + $0xc0] sm:$0xff] %v2398_v0  ;;  %295 = vst [vmem:[#allocation2 + $0xc8] sm:$0xff] %v2398_v0 }
  0x96   : > { %296 = vst [vmem:[#allocation2 + $0xd0] sm:$0xff] %v2398_v0  ;;  %297 = vst [vmem:[#allocation2 + $0xd8] sm:$0xff] %v2398_v0 }
  0x97   : > { %298 = vst [vmem:[#allocation2 + $0xe0] sm:$0xff] %v2398_v0  ;;  %299 = vst [vmem:[#allocation2 + $0xe8] sm:$0xff] %v2398_v0 }
  0x98   : > { %300 = vst [vmem:[#allocation2 + $0xf0] sm:$0xff] %v2398_v0  ;;  %301 = vst [vmem:[#allocation2 + $0xf8] sm:$0xff] %v2398_v0 }
  0x99 PF: > { %s1531_s29 = sshll.u32 %s2372_s21, 8  ;;  %v2122_v1 = vld [vmem:[%s2653_s14 + $0x4] ss:$8 sps:$4 sm:$0xff]   ;;  %v2120_v19 = vld [vmem:[%s2653_s14] ss:$8 sps:$4 sm:$0xff]   ;;  %p1581_p7 = scmp.ne.s32.totalorder %s2372_s21, 1 }
  0x9a   : > { %s367_s6 = sshra.s32 %s1531_s29, 3  ;;  %v2125_v2 = vld [vmem:[%s2653_s14 + $0x84] ss:$8 sps:$4 sm:$0xff]   ;;  %691 = vmatprep.mubr.bf16.mxu0 %v2122_v1  ;;  %v2123_v20 = vld [vmem:[%s2653_s14 + $0x80] ss:$8 sps:$4 sm:$0xff]  }
  0x9b   : > { %s1532_s30 = sshll.u32 %s367_s6, 2  ;;  %755 = vmatprep.mubr.bf16.mxu1 %v2125_v2  ;;  %v2126_v21 = vld [vmem:[%s2653_s14 + $0x14] ss:$8 sps:$4 sm:$0xff]   ;;  %v2130_v23 = vld [vmem:[%s2653_s14 + $0x10] ss:$8 sps:$4 sm:$0xff]   ;;  %v303_v51 = vld [vmem:[#allocation2] sm:$0xff] }
  0x9c   : > { %s2672_s12 = scalar_lea.vmem [#allocation6], %s1532_s30  ;;  %v2128_v22 = vld [vmem:[%s2653_s14 + $0x94] ss:$8 sps:$4 sm:$0xff]   ;;  %v2131_v24 = vld [vmem:[%s2653_s14 + $0x90] ss:$8 sps:$4 sm:$0xff]   ;;  %v319_v53 = vld [vmem:[#allocation2 + $0x80] sm:$0xff] }
  0x9d   : > { %v2104_v3 = vld [vmem:[%s2672_s12 + $0x40] sm:$0xff]   ;;  %v2106_v5 = vld [vmem:[%s2672_s12 + $0x48] sm:$0xff]   ;;  %v2108_v7 = vld [vmem:[%s2672_s12 + $0x50] sm:$0xff]  }
  0x9e   : > { %v2105_v4 = vld [vmem:[%s2672_s12] sm:$0xff]   ;;  %1757 = vmatprep.subr.bf16.mxu0 %v2104_v3  ;;  %1941 = vmatprep.subr.bf16.mxu1 %v2104_v3  ;;  %v2107_v6 = vld [vmem:[%s2672_s12 + $0x8] sm:$0xff]   ;;  %v2109_v8 = vld [vmem:[%s2672_s12 + $0x10] sm:$0xff]  }
  0x9f   : > { %1758 = vmatpush3.bf16.msra.mxu0 %v2105_v4  ;;  %1949 = vmatpush3.bf16.msra.mxu1 %v2105_v4  ;;  %v2110_v9 = vld [vmem:[%s2672_s12 + $0x58] sm:$0xff]   ;;  %v2112_v11 = vld [vmem:[%s2672_s12 + $0x60] sm:$0xff]   ;;  %v2114_v13 = vld [vmem:[%s2672_s12 + $0x68] sm:$0xff]  }
  0xa0   : > { %1759 = vmatprep.subr.bf16.mxu0 %v2106_v5  ;;  %1942 = vmatprep.subr.bf16.mxu1 %v2106_v5  ;;  %v2111_v10 = vld [vmem:[%s2672_s12 + $0x18] sm:$0xff]   ;;  %v2113_v12 = vld [vmem:[%s2672_s12 + $0x20] sm:$0xff]   ;;  %v2115_v14 = vld [vmem:[%s2672_s12 + $0x28] sm:$0xff]  }
  0xa1   : > { %v2116_v15 = vld [vmem:[%s2672_s12 + $0x70] sm:$0xff]   ;;  %v2118_v17 = vld [vmem:[%s2672_s12 + $0x78] sm:$0xff]   ;;  %v2132_v25 = vld [vmem:[%s2653_s14 + $0x24] ss:$8 sps:$4 sm:$0xff]  }
  0xa2   : > { %v2117_v16 = vld [vmem:[%s2672_s12 + $0x30] sm:$0xff]   ;;  %v2119_v18 = vld [vmem:[%s2672_s12 + $0x38] sm:$0xff]   ;;  %v2134_v26 = vld [vmem:[%s2653_s14 + $0xa4] ss:$8 sps:$4 sm:$0xff]  }
  0xa3   : > { %1760 = vmatpush3.bf16.msra.mxu0 %v2107_v6  ;;  %1950 = vmatpush3.bf16.msra.mxu1 %v2107_v6  ;;  %v2136_v27 = vld [vmem:[%s2653_s14 + $0x20] ss:$8 sps:$4 sm:$0xff]   ;;  %v2138_v29 = vld [vmem:[%s2653_s14 + $0x34] ss:$8 sps:$4 sm:$0xff]   ;;  %v2142_v31 = vld [vmem:[%s2653_s14 + $0x30] ss:$8 sps:$4 sm:$0xff]  }
  0xa4   : > { %1761 = vmatprep.subr.bf16.mxu0 %v2108_v7  ;;  %1943 = vmatprep.subr.bf16.mxu1 %v2108_v7  ;;  %v2137_v28 = vld [vmem:[%s2653_s14 + $0xa0] ss:$8 sps:$4 sm:$0xff]   ;;  %v2140_v30 = vld [vmem:[%s2653_s14 + $0xb4] ss:$8 sps:$4 sm:$0xff]   ;;  %v2143_v32 = vld [vmem:[%s2653_s14 + $0xb0] ss:$8 sps:$4 sm:$0xff]  }
  0xa5   : > { %v2144_v33 = vld [vmem:[%s2653_s14 + $0x44] ss:$8 sps:$4 sm:$0xff]   ;;  %v2148_v35 = vld [vmem:[%s2653_s14 + $0x40] ss:$8 sps:$4 sm:$0xff]   ;;  %v2150_v37 = vld [vmem:[%s2653_s14 + $0x54] ss:$8 sps:$4 sm:$0xff]  }
  0xa6   : > { %v2146_v34 = vld [vmem:[%s2653_s14 + $0xc4] ss:$8 sps:$4 sm:$0xff]   ;;  %v2149_v36 = vld [vmem:[%s2653_s14 + $0xc0] ss:$8 sps:$4 sm:$0xff]   ;;  %v2152_v38 = vld [vmem:[%s2653_s14 + $0xd4] ss:$8 sps:$4 sm:$0xff]  }
  0xa7   : > { %1762 = vmatpush3.bf16.msra.mxu0 %v2109_v8  ;;  %1951 = vmatpush3.bf16.msra.mxu1 %v2109_v8  ;;  %v2154_v39 = vld [vmem:[%s2653_s14 + $0x50] ss:$8 sps:$4 sm:$0xff]   ;;  %v2156_v41 = vld [vmem:[%s2653_s14 + $0x64] ss:$8 sps:$4 sm:$0xff]   ;;  %v2160_v43 = vld [vmem:[%s2653_s14 + $0x60] ss:$8 sps:$4 sm:$0xff]  }
  0xa8   : > { %1763 = vmatprep.subr.bf16.mxu0 %v2110_v9  ;;  %1944 = vmatprep.subr.bf16.mxu1 %v2110_v9  ;;  %v2155_v40 = vld [vmem:[%s2653_s14 + $0xd0] ss:$8 sps:$4 sm:$0xff]   ;;  %v2158_v42 = vld [vmem:[%s2653_s14 + $0xe4] ss:$8 sps:$4 sm:$0xff]   ;;  %v2161_v44 = vld [vmem:[%s2653_s14 + $0xe0] ss:$8 sps:$4 sm:$0xff]  }
  0xa9   : > { %v2162_v45 = vld [vmem:[%s2653_s14 + $0x74] ss:$8 sps:$4 sm:$0xff]   ;;  %v2166_v47 = vld [vmem:[%s2653_s14 + $0x70] ss:$8 sps:$4 sm:$0xff]   ;;  %v304_v59 = vld [vmem:[#allocation2 + $0x8] sm:$0xff] }
  0xaa   : > { %v2164_v46 = vld [vmem:[%s2653_s14 + $0xf4] ss:$8 sps:$4 sm:$0xff]   ;;  %v2167_v48 = vld [vmem:[%s2653_s14 + $0xf0] ss:$8 sps:$4 sm:$0xff]   ;;  %v320_v61 = vld [vmem:[#allocation2 + $0x88] sm:$0xff] }
  0xab   : > { %1764 = vmatpush3.bf16.msra.mxu0 %v2111_v10  ;;  %1952 = vmatpush3.bf16.msra.mxu1 %v2111_v10  ;;  %v305_v7 = vld [vmem:[#allocation2 + $0x10] sm:$0xff] }
  0xac   : > { %1765 = vmatprep.subr.bf16.mxu0 %v2112_v11  ;;  %1945 = vmatprep.subr.bf16.mxu1 %v2112_v11  ;;  %v321_v9 = vld [vmem:[#allocation2 + $0x90] sm:$0xff] }
  0xaf   : > { %1766 = vmatpush3.bf16.msra.mxu0 %v2113_v12  ;;  %1953 = vmatpush3.bf16.msra.mxu1 %v2113_v12 }
  0xb0   : > { %1767 = vmatprep.subr.bf16.mxu0 %v2114_v13  ;;  %1946 = vmatprep.subr.bf16.mxu1 %v2114_v13 }
  0xb3   : > { %1768 = vmatpush3.bf16.msra.mxu0 %v2115_v14  ;;  %1954 = vmatpush3.bf16.msra.mxu1 %v2115_v14 }
  0xb4   : > { %1769 = vmatprep.subr.bf16.mxu0 %v2116_v15  ;;  %1947 = vmatprep.subr.bf16.mxu1 %v2116_v15  ;;  %v306_v15 = vld [vmem:[#allocation2 + $0x18] sm:$0xff] }
  0xb7   : > { %1770 = vmatpush3.bf16.msra.mxu0 %v2117_v16  ;;  %1955 = vmatpush3.bf16.msra.mxu1 %v2117_v16 }
  0xb8   : > { %1771 = vmatprep.subr.bf16.mxu0 %v2118_v17  ;;  %1948 = vmatprep.subr.bf16.mxu1 %v2118_v17  ;;  %v322_v17 = vld [vmem:[#allocation2 + $0x98] sm:$0xff] }
  0xbb   : > { %1772 = vmatpush3.bf16.msra.mxu0 %v2119_v18  ;;  %1956 = vmatpush3.bf16.msra.mxu1 %v2119_v18 }
  0xbe   : > { %692 = vmatmul.mubr.bf16.vlgmr.msra.gmra.mrb[0].mxu0 %v2120_v19  ;;  %756 = vmatmul.mubr.bf16.vlgmr.msra.gmra.mrb[0].mxu1 %v2123_v20 }
  0xbf   : > { %699 = vmatprep.mubr.bf16.mxu0 %v2126_v21  ;;  %763 = vmatprep.mubr.bf16.mxu1 %v2128_v22 }
  0xc6   : > { %700 = vmatmul.mubr.bf16.gmra.mrb[4].mxu0 %v2130_v23  ;;  %764 = vmatmul.mubr.bf16.gmra.mrb[4].mxu1 %v2131_v24 }
  0xc7   : > { %707 = vmatprep.mubr.bf16.mxu0 %v2132_v25  ;;  %771 = vmatprep.mubr.bf16.mxu1 %v2134_v26 }
  0xce   : > { %708 = vmatmul.mubr.bf16.gmra.mrb[8].mxu0 %v2136_v27  ;;  %772 = vmatmul.mubr.bf16.gmra.mrb[8].mxu1 %v2137_v28  ;;  %v307_v27 = vld [vmem:[#allocation2 + $0x20] sm:$0xff] }
  0xcf   : > { %715 = vmatprep.mubr.bf16.mxu0 %v2138_v29  ;;  %779 = vmatprep.mubr.bf16.mxu1 %v2140_v30  ;;  %v323_v29 = vld [vmem:[#allocation2 + $0xa0] sm:$0xff] }
  0xd6   : > { %716 = vmatmul.mubr.bf16.gmra.mrb[12].mxu0 %v2142_v31  ;;  %780 = vmatmul.mubr.bf16.gmra.mrb[12].mxu1 %v2143_v32 }
  0xd7   : > { %723 = vmatprep.mubr.bf16.mxu0 %v2144_v33  ;;  %787 = vmatprep.mubr.bf16.mxu1 %v2146_v34 }
  0xde   : > { %724 = vmatmul.mubr.bf16.gmra.mrb[16].mxu0 %v2148_v35  ;;  %788 = vmatmul.mubr.bf16.gmra.mrb[16].mxu1 %v2149_v36  ;;  %v308_v35 = vld [vmem:[#allocation2 + $0x28] sm:$0xff] }
  0xdf   : > { %731 = vmatprep.mubr.bf16.mxu0 %v2150_v37  ;;  %795 = vmatprep.mubr.bf16.mxu1 %v2152_v38  ;;  %v324_v37 = vld [vmem:[#allocation2 + $0xa8] sm:$0xff] }
  0xe6   : > { %732 = vmatmul.mubr.bf16.gmra.mrb[20].mxu0 %v2154_v39  ;;  %796 = vmatmul.mubr.bf16.gmra.mrb[20].mxu1 %v2155_v40 }
  0xe7   : > { %739 = vmatprep.mubr.bf16.mxu0 %v2156_v41  ;;  %803 = vmatprep.mubr.bf16.mxu1 %v2158_v42 }
  0xee   : > { %740 = vmatmul.mubr.bf16.gmra.mrb[24].mxu0 %v2160_v43  ;;  %804 = vmatmul.mubr.bf16.gmra.mrb[24].mxu1 %v2161_v44 }
  0xef   : > { %747 = vmatprep.mubr.bf16.mxu0 %v2162_v45  ;;  %811 = vmatprep.mubr.bf16.mxu1 %v2164_v46 }
  0xf6   : > { %748 = vmatmul.mubr.bf16.gmra.mrb[28].mxu0 %v2166_v47  ;;  %812 = vmatmul.mubr.bf16.gmra.mrb[28].mxu1 %v2167_v48  ;;  %v309_v47 = vld [vmem:[#allocation2 + $0x30] sm:$0xff] }
 0x191   : > { %v1773_v49 = vpop.f32.mrb[0].mxu0  ;;  %v1821_v50 = vpop.f32.mrb[0].mxu1 }
 0x192   : > { %v1774_v52 = vpop.f32.mrb[1].mxu0  ;;  %v1822_v54 = vpop.f32.mrb[1].mxu1 }
 0x193   : > { %v1775_v55 = vadd.f32 %v1774_v52, %v1773_v49  ;;  %v1823_v56 = vadd.f32 %v1822_v54, %v1821_v50  ;;  %v1776_v57 = vpop.f32.mrb[2].mxu0  ;;  %v1824_v58 = vpop.f32.mrb[2].mxu1  ;;  %v325_v49 = vld [vmem:[#allocation2 + $0xb0] sm:$0xff] }
 0x194   : > { %v1777_v60 = vpop.f32.mrb[3].mxu0  ;;  %v1825_v62 = vpop.f32.mrb[3].mxu1 }
 0x195   : > { %v820_v63 = vadd.f32 %v1775_v55, %v303_v51  ;;  %v836_v0 = vadd.f32 %v1823_v56, %v319_v53  ;;  %v1778_v1 = vadd.f32 %v1777_v60, %v1776_v57  ;;  %v1826_v2 = vadd.f32 %v1825_v62, %v1824_v58  ;;  %v310_v55 = vld [vmem:[#allocation2 + $0x38] sm:$0xff] }
 0x196   : > { %v326_v57 = vld [vmem:[#allocation2 + $0xb8] sm:$0xff] }
 0x197   : > { %852 = vst [vmem:[#allocation2] sm:$0xff] %v820_v63  ;;  %868 = vst [vmem:[#allocation2 + $0x80] sm:$0xff] %v836_v0  ;;  %v821_v3 = vadd.f32 %v1778_v1, %v304_v59  ;;  %v837_v4 = vadd.f32 %v1826_v2, %v320_v61 }
 0x199   : > { %853 = vst [vmem:[#allocation2 + $0x8] sm:$0xff] %v821_v3  ;;  %869 = vst [vmem:[#allocation2 + $0x88] sm:$0xff] %v837_v4  ;;  %v1779_v5 = vpop.f32.mrb[4].mxu0  ;;  %v1827_v6 = vpop.f32.mrb[4].mxu1  ;;  %v311_v3 = vld [vmem:[#allocation2 + $0x40] sm:$0xff] }
 0x19a   : > { %v1780_v8 = vpop.f32.mrb[5].mxu0  ;;  %v1828_v10 = vpop.f32.mrb[5].mxu1 }
 0x19b   : > { %v1781_v11 = vadd.f32 %v1780_v8, %v1779_v5  ;;  %v1829_v12 = vadd.f32 %v1828_v10, %v1827_v6  ;;  %v1782_v13 = vpop.f32.mrb[6].mxu0  ;;  %v1830_v14 = vpop.f32.mrb[6].mxu1  ;;  %v327_v5 = vld [vmem:[#allocation2 + $0xc0] sm:$0xff] }
 0x19c   : > { %v1783_v16 = vpop.f32.mrb[7].mxu0  ;;  %v1831_v18 = vpop.f32.mrb[7].mxu1 }
 0x19d   : > { %v822_v19 = vadd.f32 %v1781_v11, %v305_v7  ;;  %v838_v20 = vadd.f32 %v1829_v12, %v321_v9  ;;  %v1784_v21 = vadd.f32 %v1783_v16, %v1782_v13  ;;  %v1832_v22 = vadd.f32 %v1831_v18, %v1830_v14  ;;  %v312_v11 = vld [vmem:[#allocation2 + $0x48] sm:$0xff] }
 0x19e   : > { %v328_v13 = vld [vmem:[#allocation2 + $0xc8] sm:$0xff] }
 0x19f   : > { %854 = vst [vmem:[#allocation2 + $0x10] sm:$0xff] %v822_v19  ;;  %870 = vst [vmem:[#allocation2 + $0x90] sm:$0xff] %v838_v20  ;;  %v823_v23 = vadd.f32 %v1784_v21, %v306_v15  ;;  %v839_v24 = vadd.f32 %v1832_v22, %v322_v17 }
 0x1a1   : > { %855 = vst [vmem:[#allocation2 + $0x18] sm:$0xff] %v823_v23  ;;  %871 = vst [vmem:[#allocation2 + $0x98] sm:$0xff] %v839_v24  ;;  %v1785_v25 = vpop.f32.mrb[8].mxu0  ;;  %v1833_v26 = vpop.f32.mrb[8].mxu1  ;;  %v313_v23 = vld [vmem:[#allocation2 + $0x50] sm:$0xff] }
 0x1a2   : > { %v1786_v28 = vpop.f32.mrb[9].mxu0  ;;  %v1834_v30 = vpop.f32.mrb[9].mxu1 }
 0x1a3   : > { %v1787_v31 = vadd.f32 %v1786_v28, %v1785_v25  ;;  %v1835_v32 = vadd.f32 %v1834_v30, %v1833_v26  ;;  %v1788_v33 = vpop.f32.mrb[10].mxu0  ;;  %v1836_v34 = vpop.f32.mrb[10].mxu1  ;;  %v329_v25 = vld [vmem:[#allocation2 + $0xd0] sm:$0xff] }
 0x1a4   : > { %v1789_v36 = vpop.f32.mrb[11].mxu0  ;;  %v1837_v38 = vpop.f32.mrb[11].mxu1 }
 0x1a5   : > { %v824_v39 = vadd.f32 %v1787_v31, %v307_v27  ;;  %v840_v40 = vadd.f32 %v1835_v32, %v323_v29  ;;  %v1790_v41 = vadd.f32 %v1789_v36, %v1788_v33  ;;  %v1838_v42 = vadd.f32 %v1837_v38, %v1836_v34  ;;  %v314_v31 = vld [vmem:[#allocation2 + $0x58] sm:$0xff] }
 0x1a6   : > { %v330_v33 = vld [vmem:[#allocation2 + $0xd8] sm:$0xff] }
 0x1a7   : > { %856 = vst [vmem:[#allocation2 + $0x20] sm:$0xff] %v824_v39  ;;  %872 = vst [vmem:[#allocation2 + $0xa0] sm:$0xff] %v840_v40  ;;  %v825_v43 = vadd.f32 %v1790_v41, %v308_v35  ;;  %v841_v44 = vadd.f32 %v1838_v42, %v324_v37 }
 0x1a9   : > { %857 = vst [vmem:[#allocation2 + $0x28] sm:$0xff] %v825_v43  ;;  %873 = vst [vmem:[#allocation2 + $0xa8] sm:$0xff] %v841_v44  ;;  %v1791_v45 = vpop.f32.mrb[12].mxu0  ;;  %v1839_v46 = vpop.f32.mrb[12].mxu1  ;;  %v315_v43 = vld [vmem:[#allocation2 + $0x60] sm:$0xff] }
 0x1aa   : > { %v1792_v48 = vpop.f32.mrb[13].mxu0  ;;  %v1840_v50 = vpop.f32.mrb[13].mxu1 }
 0x1ab   : > { %v1793_v51 = vadd.f32 %v1792_v48, %v1791_v45  ;;  %v1841_v52 = vadd.f32 %v1840_v50, %v1839_v46  ;;  %v1794_v53 = vpop.f32.mrb[14].mxu0  ;;  %v1842_v54 = vpop.f32.mrb[14].mxu1  ;;  %v331_v45 = vld [vmem:[#allocation2 + $0xe0] sm:$0xff] }
 0x1ac   : > { %v1795_v56 = vpop.f32.mrb[15].mxu0  ;;  %v1843_v58 = vpop.f32.mrb[15].mxu1 }
 0x1ad   : > { %v826_v59 = vadd.f32 %v1793_v51, %v309_v47  ;;  %v842_v60 = vadd.f32 %v1841_v52, %v325_v49  ;;  %v1796_v61 = vadd.f32 %v1795_v56, %v1794_v53  ;;  %v1844_v62 = vadd.f32 %v1843_v58, %v1842_v54  ;;  %v316_v51 = vld [vmem:[#allocation2 + $0x68] sm:$0xff] }
 0x1ae   : > { %v332_v53 = vld [vmem:[#allocation2 + $0xe8] sm:$0xff] }
 0x1af   : > { %858 = vst [vmem:[#allocation2 + $0x30] sm:$0xff] %v826_v59  ;;  %874 = vst [vmem:[#allocation2 + $0xb0] sm:$0xff] %v842_v60  ;;  %v827_v63 = vadd.f32 %v1796_v61, %v310_v55  ;;  %v843_v0 = vadd.f32 %v1844_v62, %v326_v57 }
 0x1b1   : > { %859 = vst [vmem:[#allocation2 + $0x38] sm:$0xff] %v827_v63  ;;  %875 = vst [vmem:[#allocation2 + $0xb8] sm:$0xff] %v843_v0  ;;  %v1797_v1 = vpop.f32.mrb[16].mxu0  ;;  %v1845_v2 = vpop.f32.mrb[16].mxu1  ;;  %v317_v63 = vld [vmem:[#allocation2 + $0x70] sm:$0xff] }
 0x1b2   : > { %v1798_v4 = vpop.f32.mrb[17].mxu0  ;;  %v1846_v6 = vpop.f32.mrb[17].mxu1 }
 0x1b3   : > { %v1799_v7 = vadd.f32 %v1798_v4, %v1797_v1  ;;  %v1847_v8 = vadd.f32 %v1846_v6, %v1845_v2  ;;  %v1800_v9 = vpop.f32.mrb[18].mxu0  ;;  %v1848_v10 = vpop.f32.mrb[18].mxu1  ;;  %v333_v1 = vld [vmem:[#allocation2 + $0xf0] sm:$0xff] }
 0x1b4   : > { %v1801_v12 = vpop.f32.mrb[19].mxu0  ;;  %v1849_v14 = vpop.f32.mrb[19].mxu1 }
 0x1b5   : > { %v828_v15 = vadd.f32 %v1799_v7, %v311_v3  ;;  %v844_v16 = vadd.f32 %v1847_v8, %v327_v5  ;;  %v1802_v17 = vadd.f32 %v1801_v12, %v1800_v9  ;;  %v1850_v18 = vadd.f32 %v1849_v14, %v1848_v10  ;;  %v318_v7 = vld [vmem:[#allocation2 + $0x78] sm:$0xff] }
 0x1b6   : > { %v334_v9 = vld [vmem:[#allocation2 + $0xf8] sm:$0xff] }
 0x1b7   : > { %860 = vst [vmem:[#allocation2 + $0x40] sm:$0xff] %v828_v15  ;;  %876 = vst [vmem:[#allocation2 + $0xc0] sm:$0xff] %v844_v16  ;;  %v829_v19 = vadd.f32 %v1802_v17, %v312_v11  ;;  %v845_v20 = vadd.f32 %v1850_v18, %v328_v13  ;;  %v2168_v17 = vld [vmem:[#allocation8] sm:$0xff] (!%p1581_p7)   ;;  %v2169_v18 = vld [vmem:[#allocation8 + $0x8] sm:$0xff] (!%p1581_p7)  }
 0x1b8   : > { %1893 = vmatprep.subr.bf16.mxu0 (!%p1581_p7), %v2168_v17  ;;  %1957 = vmatprep.subr.bf16.mxu1 (!%p1581_p7), %v2168_v17 }
 0x1b9   : > { %861 = vst [vmem:[#allocation2 + $0x48] sm:$0xff] %v829_v19  ;;  %877 = vst [vmem:[#allocation2 + $0xc8] sm:$0xff] %v845_v20  ;;  %v1803_v21 = vpop.f32.mrb[20].mxu0  ;;  %v1851_v22 = vpop.f32.mrb[20].mxu1  ;;  %1894 = vmatpush3.bf16.msra.mxu0 (!%p1581_p7), %v2168_v17  ;;  %1965 = vmatpush3.bf16.msra.mxu1 (!%p1581_p7), %v2168_v17  ;;  %v2170_v19 = vld [vmem:[#allocation8 + $0x10] sm:$0xff] (!%p1581_p7)   ;;  %v2171_v20 = vld [vmem:[#allocation8 + $0x18] sm:$0xff] (!%p1581_p7)  }
 0x1ba   : > { %v1804_v24 = vpop.f32.mrb[21].mxu0  ;;  %v1852_v26 = vpop.f32.mrb[21].mxu1  ;;  %1895 = vmatprep.subr.bf16.mxu0 (!%p1581_p7), %v2169_v18  ;;  %1958 = vmatprep.subr.bf16.mxu1 (!%p1581_p7), %v2169_v18 }
 0x1bb   : > { %v1805_v27 = vadd.f32 %v1804_v24, %v1803_v21  ;;  %v1853_v28 = vadd.f32 %v1852_v26, %v1851_v22  ;;  %v1806_v29 = vpop.f32.mrb[22].mxu0  ;;  %v1854_v30 = vpop.f32.mrb[22].mxu1  ;;  %v888_v21 = vld [vmem:[#allocation2] sm:$0xff] (!%p1581_p7)  ;;  %v889_v22 = vld [vmem:[#allocation2 + $0x8] sm:$0xff] (!%p1581_p7) }
 0x1bc   : > { %v1807_v32 = vpop.f32.mrb[23].mxu0  ;;  %v1855_v34 = vpop.f32.mrb[23].mxu1  ;;  %v904_v26 = vld [vmem:[#allocation2 + $0x80] sm:$0xff] (!%p1581_p7) }
 0x1bd   : > { %v830_v35 = vadd.f32 %v1805_v27, %v313_v23  ;;  %v846_v36 = vadd.f32 %v1853_v28, %v329_v25  ;;  %v1808_v37 = vadd.f32 %v1807_v32, %v1806_v29  ;;  %v1856_v38 = vadd.f32 %v1855_v34, %v1854_v30  ;;  %1896 = vmatpush3.bf16.msra.mxu0 (!%p1581_p7), %v2169_v18  ;;  %v2724_v23 = vld [vmem:[%s2848_s2] ss:$0 sm:$0xff] (!%p1581_p7)  ;;  %v905_v27 = vld [vmem:[#allocation2 + $0x88] sm:$0xff] (!%p1581_p7) }
 0x1be   : > { %1966 = vmatpush3.bf16.msra.mxu1 (!%p1581_p7), %v2169_v18  ;;  %1897 = vmatprep.subr.bf16.mxu0 (!%p1581_p7), %v2170_v19  ;;  %v927_v24 = vadd.f32 (!%p1581_p7), %v2724_v23, %v888_v21  ;;  %v928_v25 = vadd.f32 (!%p1581_p7), %v2724_v23, %v889_v22  ;;  %v943_v28 = vadd.f32 (!%p1581_p7), %v2724_v23, %v904_v26  ;;  %v2172_v32 = vld [vmem:[#allocation8 + $0x20] sm:$0xff] (!%p1581_p7)  }
 0x1bf   : > { %862 = vst [vmem:[#allocation2 + $0x50] sm:$0xff] %v830_v35  ;;  %878 = vst [vmem:[#allocation2 + $0xd0] sm:$0xff] %v846_v36  ;;  %v831_v39 = vadd.f32 %v1808_v37, %v314_v31  ;;  %v847_v40 = vadd.f32 %v1856_v38, %v330_v33  ;;  %1959 = vmatprep.subr.bf16.mxu1 (!%p1581_p7), %v2170_v19  ;;  %v944_v29 = vadd.f32 (!%p1581_p7), %v2724_v23, %v905_v27  ;;  %v2173_v37 = vld [vmem:[#allocation8 + $0x28] sm:$0xff] (!%p1581_p7)   ;;  %v890_v38 = vld [vmem:[#allocation2 + $0x10] sm:$0xff] (!%p1581_p7) }
 0x1c0   : > { %v959_v30 = vmax.f32 (!%p1581_p7), %v927_v24, 0.0  ;;  %v960_v31 = vmax.f32 (!%p1581_p7), %v928_v25, 0.0  ;;  %v975_v33 = vmax.f32 (!%p1581_p7), %v943_v28, 0.0 }
 0x1c1   : > { %863 = vst [vmem:[#allocation2 + $0x58] sm:$0xff] %v831_v39  ;;  %879 = vst [vmem:[#allocation2 + $0xd8] sm:$0xff] %v847_v40  ;;  %v1809_v41 = vpop.f32.mrb[24].mxu0  ;;  %v1857_v42 = vpop.f32.mrb[24].mxu1  ;;  %1898 = vmatpush3.bf16.msra.mxu0 (!%p1581_p7), %v2170_v19  ;;  %v976_v34 = vmax.f32 (!%p1581_p7), %v944_v29, 0.0  ;;  %v891_v39 = vld [vmem:[#allocation2 + $0x18] sm:$0xff] (!%p1581_p7) }
 0x1c2   : > { %v1810_v44 = vpop.f32.mrb[25].mxu0  ;;  %v1858_v46 = vpop.f32.mrb[25].mxu1  ;;  %1967 = vmatpush3.bf16.msra.mxu1 (!%p1581_p7), %v2170_v19  ;;  %1899 = vmatprep.subr.bf16.mxu0 (!%p1581_p7), %v2171_v20  ;;  %v991_v35 = vpack.c.bf16 (!%p1581_p7), %v960_v31, %v959_v30  ;;  %v906_v40 = vld [vmem:[#allocation2 + $0x90] sm:$0xff] (!%p1581_p7) }
 0x1c3   : > { %v1811_v47 = vadd.f32 %v1810_v44, %v1809_v41  ;;  %v1859_v48 = vadd.f32 %v1858_v46, %v1857_v42  ;;  %v1812_v49 = vpop.f32.mrb[26].mxu0  ;;  %v1860_v50 = vpop.f32.mrb[26].mxu1  ;;  %1960 = vmatprep.subr.bf16.mxu1 (!%p1581_p7), %v2171_v20  ;;  %v999_v36 = vpack.c.bf16 (!%p1581_p7), %v976_v34, %v975_v33  ;;  %v907_v41 = vld [vmem:[#allocation2 + $0x98] sm:$0xff] (!%p1581_p7)  ;;  %v892_v42 = vld [vmem:[#allocation2 + $0x20] sm:$0xff] (!%p1581_p7)  ;;  %v2174_v44 = vld [vmem:[#allocation8 + $0x30] sm:$0xff] (!%p1581_p7)   ;;  %v930_v46 = vadd.f32 (!%p1581_p7), %v2724_v23, %v891_v39 }
 0x1c4   : > { %v1813_v52 = vpop.f32.mrb[27].mxu0  ;;  %v1861_v54 = vpop.f32.mrb[27].mxu1  ;;  %1909 = vmatprep.mubr.bf16.mxu0 (!%p1581_p7), %v991_v35 }
 0x1c5   : > { %v832_v55 = vadd.f32 %v1811_v47, %v315_v43  ;;  %v848_v56 = vadd.f32 %v1859_v48, %v331_v45  ;;  %v1814_v57 = vadd.f32 %v1813_v52, %v1812_v49  ;;  %v1862_v58 = vadd.f32 %v1861_v54, %v1860_v50  ;;  %1900 = vmatpush3.bf16.msra.mxu0 (!%p1581_p7), %v2171_v20  ;;  %v893_v43 = vld [vmem:[#allocation2 + $0x28] sm:$0xff] (!%p1581_p7)  ;;  %v908_v47 = vld [vmem:[#allocation2 + $0xa0] sm:$0xff] (!%p1581_p7) }
 0x1c6   : > { %1968 = vmatpush3.bf16.msra.mxu1 (!%p1581_p7), %v2171_v20  ;;  %1901 = vmatprep.subr.bf16.mxu0 (!%p1581_p7), %v2172_v32  ;;  %v929_v45 = vadd.f32 (!%p1581_p7), %v2724_v23, %v890_v38  ;;  %v909_v48 = vld [vmem:[#allocation2 + $0xa8] sm:$0xff] (!%p1581_p7)  ;;  %v945_v49 = vadd.f32 (!%p1581_p7), %v2724_v23, %v906_v40  ;;  %v946_v50 = vadd.f32 (!%p1581_p7), %v2724_v23, %v907_v41  ;;  %v898_v22 = vld [vmem:[#allocation2 + $0x50] sm:$0xff] (!%p1581_p7) }
 0x1c7   : > { %864 = vst [vmem:[#allocation2 + $0x60] sm:$0xff] %v832_v55  ;;  %880 = vst [vmem:[#allocation2 + $0xe0] sm:$0xff] %v848_v56  ;;  %v833_v59 = vadd.f32 %v1814_v57, %v316_v51  ;;  %v849_v60 = vadd.f32 %v1862_v58, %v332_v53  ;;  %1961 = vmatprep.subr.bf16.mxu1 (!%p1581_p7), %v2172_v32  ;;  %1925 = vmatprep.mubr.bf16.mxu1 (!%p1581_p7), %v999_v36  ;;  %v2175_v55 = vld [vmem:[#allocation8 + $0x38] sm:$0xff] (!%p1581_p7)   ;;  %v962_v57 = vmax.f32 (!%p1581_p7), %v930_v46, 0.0  ;;  %v914_v29 = vld [vmem:[#allocation2 + $0xd0] sm:$0xff] (!%p1581_p7) }
 0x1c8   : > { %v931_v51 = vadd.f32 (!%p1581_p7), %v2724_v23, %v892_v42  ;;  %v932_v52 = vadd.f32 (!%p1581_p7), %v2724_v23, %v893_v43  ;;  %v947_v53 = vadd.f32 (!%p1581_p7), %v2724_v23, %v908_v47  ;;  %v948_v54 = vadd.f32 (!%p1581_p7), %v2724_v23, %v909_v48  ;;  %v899_v24 = vld [vmem:[#allocation2 + $0x58] sm:$0xff] (!%p1581_p7) }
 0x1c9   : > { %865 = vst [vmem:[#allocation2 + $0x68] sm:$0xff] %v833_v59  ;;  %881 = vst [vmem:[#allocation2 + $0xe8] sm:$0xff] %v849_v60  ;;  %v1815_v61 = vpop.f32.mrb[28].mxu0  ;;  %v1863_v62 = vpop.f32.mrb[28].mxu1  ;;  %1902 = vmatpush3.bf16.msra.mxu0 (!%p1581_p7), %v2172_v32  ;;  %v961_v56 = vmax.f32 (!%p1581_p7), %v929_v45, 0.0  ;;  %v977_v58 = vmax.f32 (!%p1581_p7), %v945_v49, 0.0  ;;  %v938_v38 = vadd.f32 (!%p1581_p7), %v2724_v23, %v899_v24  ;;  %v953_v39 = vadd.f32 (!%p1581_p7), %v2724_v23, %v914_v29 }
 0x1ca   : > { %v1816_v0 = vpop.f32.mrb[29].mxu0  ;;  %v1864_v2 = vpop.f32.mrb[29].mxu1  ;;  %1969 = vmatpush3.bf16.msra.mxu1 (!%p1581_p7), %v2172_v32  ;;  %1903 = vmatprep.subr.bf16.mxu0 (!%p1581_p7), %v2173_v37  ;;  %v978_v59 = vmax.f32 (!%p1581_p7), %v946_v50, 0.0  ;;  %v963_v60 = vmax.f32 (!%p1581_p7), %v931_v51, 0.0  ;;  %v915_v30 = vld [vmem:[#allocation2 + $0xd8] sm:$0xff] (!%p1581_p7) }
 0x1cb   : > { %v1817_v3 = vadd.f32 %v1816_v0, %v1815_v61  ;;  %v1865_v4 = vadd.f32 %v1864_v2, %v1863_v62  ;;  %v1818_v5 = vpop.f32.mrb[30].mxu0  ;;  %v1866_v6 = vpop.f32.mrb[30].mxu1  ;;  %887 = sbr.rel (%p1581_p7) target bundleno = 715 (0x2cb), region = 56  ;;  %1962 = vmatprep.subr.bf16.mxu1 (!%p1581_p7), %v2173_v37  ;;  %v964_v61 = vmax.f32 (!%p1581_p7), %v932_v52, 0.0  ;;  %v894_v62 = vld [vmem:[#allocation2 + $0x30] sm:$0xff] (!%p1581_p7)  ;;  %v980_v2 = vmax.f32 (!%p1581_p7), %v948_v54, 0.0 }
 0x1cc   : > { %v1819_v8 = vpop.f32.mrb[31].mxu0  ;;  %v1867_v10 = vpop.f32.mrb[31].mxu1  ;;  %v910_v0 = vld [vmem:[#allocation2 + $0xb0] sm:$0xff] (!%p1581_p7)  ;;  %v954_v40 = vadd.f32 (!%p1581_p7), %v2724_v23, %v915_v30  ;;  %v970_v50 = vmax.f32 (!%p1581_p7), %v938_v38, 0.0  ;;  %v985_v51 = vmax.f32 (!%p1581_p7), %v953_v39, 0.0 }
 0x1cd   : > { %v834_v11 = vadd.f32 %v1817_v3, %v317_v63  ;;  %v850_v12 = vadd.f32 %v1865_v4, %v333_v1  ;;  %v1820_v13 = vadd.f32 %v1819_v8, %v1818_v5  ;;  %v1868_v14 = vadd.f32 %v1867_v10, %v1866_v6  ;;  %1904 = vmatpush3.bf16.msra.mxu0 (!%p1581_p7), %v2173_v37  ;;  %v895_v63 = vld [vmem:[#allocation2 + $0x38] sm:$0xff] (!%p1581_p7)  ;;  %v896_v4 = vld [vmem:[#allocation2 + $0x40] sm:$0xff] (!%p1581_p7)  ;;  %v897_v5 = vld [vmem:[#allocation2 + $0x48] sm:$0xff] (!%p1581_p7) }
 0x1ce   : > { %1970 = vmatpush3.bf16.msra.mxu1 (!%p1581_p7), %v2173_v37  ;;  %1905 = vmatprep.subr.bf16.mxu0 (!%p1581_p7), %v2174_v44  ;;  %v979_v1 = vmax.f32 (!%p1581_p7), %v947_v53, 0.0  ;;  %v911_v3 = vld [vmem:[#allocation2 + $0xb8] sm:$0xff] (!%p1581_p7)  ;;  %v992_v6 = vpack.c.bf16 (!%p1581_p7), %v962_v57, %v961_v56  ;;  %v913_v8 = vld [vmem:[#allocation2 + $0xc8] sm:$0xff] (!%p1581_p7)  ;;  %v933_v10 = vadd.f32 (!%p1581_p7), %v2724_v23, %v894_v62  ;;  %v900_v33 = vld [vmem:[#allocation2 + $0x60] sm:$0xff] (!%p1581_p7)  ;;  %v937_v37 = vadd.f32 (!%p1581_p7), %v2724_v23, %v898_v22 }
 0x1cf   : > { %866 = vst [vmem:[#allocation2 + $0x70] sm:$0xff] %v834_v11  ;;  %882 = vst [vmem:[#allocation2 + $0xf0] sm:$0xff] %v850_v12  ;;  %v835_v15 = vadd.f32 %v1820_v13, %v318_v7  ;;  %v851_v16 = vadd.f32 %v1868_v14, %v334_v9  ;;  %1963 = vmatprep.subr.bf16.mxu1 (!%p1581_p7), %v2174_v44  ;;  %v912_v7 = vld [vmem:[#allocation2 + $0xc0] sm:$0xff] (!%p1581_p7)  ;;  %v1000_v9 = vpack.c.bf16 (!%p1581_p7), %v978_v59, %v977_v58 }
 0x1d0   : > { %v934_v11 = vadd.f32 (!%p1581_p7), %v2724_v23, %v895_v63  ;;  %v949_v12 = vadd.f32 (!%p1581_p7), %v2724_v23, %v910_v0  ;;  %v993_v13 = vpack.c.bf16 (!%p1581_p7), %v964_v61, %v963_v60  ;;  %v950_v14 = vadd.f32 (!%p1581_p7), %v2724_v23, %v911_v3  ;;  %v901_v34 = vld [vmem:[#allocation2 + $0x68] sm:$0xff] (!%p1581_p7)  ;;  %v916_v35 = vld [vmem:[#allocation2 + $0xe0] sm:$0xff] (!%p1581_p7) }
 0x1d1   : > { %867 = vst [vmem:[#allocation2 + $0x78] sm:$0xff] %v835_v15  ;;  %883 = vst [vmem:[#allocation2 + $0xf8] sm:$0xff] %v851_v16  ;;  %1906 = vmatpush3.bf16.msra.mxu0 (!%p1581_p7), %v2174_v44  ;;  %v935_v15 = vadd.f32 (!%p1581_p7), %v2724_v23, %v896_v4  ;;  %v936_v16 = vadd.f32 (!%p1581_p7), %v2724_v23, %v897_v5  ;;  %v1001_v17 = vpack.c.bf16 (!%p1581_p7), %v980_v2, %v979_v1  ;;  %v917_v36 = vld [vmem:[#allocation2 + $0xe8] sm:$0xff] (!%p1581_p7) }
 0x1d2   : > { %1971 = vmatpush3.bf16.msra.mxu1 %v2174_v44  ;;  %1907 = vmatprep.subr.bf16.mxu0 %v2175_v55  ;;  %v951_v18 = vadd.f32 %v2724_v23, %v912_v7  ;;  %v952_v19 = vadd.f32 %v2724_v23, %v913_v8  ;;  %v965_v20 = vmax.f32 %v933_v10, 0.0  ;;  %v966_v21 = vmax.f32 %v934_v11, 0.0 }
 0x1d3   : > { %1964 = vmatprep.subr.bf16.mxu1 %v2175_v55  ;;  %v981_v25 = vmax.f32 %v949_v12, 0.0  ;;  %v982_v26 = vmax.f32 %v950_v14, 0.0  ;;  %v967_v27 = vmax.f32 %v935_v15, 0.0  ;;  %v968_v28 = vmax.f32 %v936_v16, 0.0 }
 0x1d4   : > { %v983_v31 = vmax.f32 %v951_v18, 0.0  ;;  %v984_v32 = vmax.f32 %v952_v19, 0.0  ;;  %v994_v41 = vpack.c.bf16 %v966_v21, %v965_v20  ;;  %v939_v44 = vadd.f32 %v2724_v23, %v900_v33 }
 0x1d5   : > { %1908 = vmatpush3.bf16.msra.mxu0 %v2175_v55  ;;  %v1002_v42 = vpack.c.bf16 %v982_v26, %v981_v25  ;;  %v995_v43 = vpack.c.bf16 %v968_v28, %v967_v27  ;;  %v940_v46 = vadd.f32 %v2724_v23, %v901_v34  ;;  %v955_v47 = vadd.f32 %v2724_v23, %v916_v35 }
 0x1d6   : > { %1972 = vmatpush3.bf16.msra.mxu1 %v2175_v55  ;;  %v1003_v45 = vpack.c.bf16 %v984_v32, %v983_v31  ;;  %v956_v48 = vadd.f32 %v2724_v23, %v917_v36  ;;  %v969_v49 = vmax.f32 %v937_v37, 0.0  ;;  %v986_v52 = vmax.f32 %v954_v40, 0.0  ;;  %v902_v53 = vld [vmem:[#allocation2 + $0x70] sm:$0xff] }
 0x1d7   : > { %v971_v55 = vmax.f32 %v939_v44, 0.0  ;;  %v972_v56 = vmax.f32 %v940_v46, 0.0  ;;  %v987_v57 = vmax.f32 %v955_v47, 0.0  ;;  %v918_v59 = vld [vmem:[#allocation2 + $0xf0] sm:$0xff]  ;;  %v941_v63 = vadd.f32 %v2724_v23, %v902_v53 }
 0x1d8   : > { %1910 = vmatmul.mubr.bf16.vlgmr.msra.gmra.mrb[0].mxu0 %v992_v6  ;;  %v903_v54 = vld [vmem:[#allocation2 + $0x78] sm:$0xff]  ;;  %v988_v58 = vmax.f32 %v956_v48, 0.0  ;;  %v996_v61 = vpack.c.bf16 %v970_v50, %v969_v49  ;;  %v1004_v62 = vpack.c.bf16 %v986_v52, %v985_v51  ;;  %v957_v1 = vadd.f32 %v2724_v23, %v918_v59 }
 0x1d9   : > { %1926 = vmatmul.mubr.bf16.vlgmr.msra.gmra.mrb[0].mxu1 %v1000_v9  ;;  %1913 = vmatprep.mubr.bf16.mxu0 %v993_v13  ;;  %v919_v60 = vld [vmem:[#allocation2 + $0xf8] sm:$0xff]  ;;  %v942_v0 = vadd.f32 %v2724_v23, %v903_v54  ;;  %v997_v3 = vpack.c.bf16 %v972_v56, %v971_v55  ;;  %v973_v5 = vmax.f32 %v941_v63, 0.0 }
 0x1da   : > { %1929 = vmatprep.mubr.bf16.mxu1 %v1001_v17  ;;  %v958_v2 = vadd.f32 %v2724_v23, %v919_v60  ;;  %v1005_v4 = vpack.c.bf16 %v988_v58, %v987_v57  ;;  %v989_v7 = vmax.f32 %v957_v1, 0.0 }
 0x1db   : > { %v974_v6 = vmax.f32 %v942_v0, 0.0 }
 0x1dc   : > { %v990_v8 = vmax.f32 %v958_v2, 0.0 }
 0x1dd   : > { %v998_v9 = vpack.c.bf16 %v974_v6, %v973_v5 }
 0x1de   : > { %v1006_v10 = vpack.c.bf16 %v990_v8, %v989_v7 }
 0x1e0   : > { %1914 = vmatmul.mubr.bf16.gmra.mrb[4].mxu0 %v994_v41 }
 0x1e1   : > { %1930 = vmatmul.mubr.bf16.gmra.mrb[4].mxu1 %v1002_v42  ;;  %1917 = vmatprep.mubr.bf16.mxu0 %v995_v43 }
 0x1e2   : > { %1933 = vmatprep.mubr.bf16.mxu1 %v1003_v45 }
 0x1e8   : > { %1918 = vmatmul.mubr.bf16.gmra.mrb[8].mxu0 %v996_v61 }
 0x1e9   : > { %1934 = vmatmul.mubr.bf16.gmra.mrb[8].mxu1 %v1004_v62  ;;  %1921 = vmatprep.mubr.bf16.mxu0 %v997_v3 }
 0x1ea   : > { %1937 = vmatprep.mubr.bf16.mxu1 %v1005_v4 }
 0x1f0   : > { %1922 = vmatmul.mubr.bf16.gmra.mrb[12].mxu0 %v998_v9 }
 0x1f1   : > { %1938 = vmatmul.mubr.bf16.gmra.mrb[12].mxu1 %v1006_v10 }
 0x2ab   : > { %v1911_v11 = vpop.f32.mrb[0].mxu0 }
 0x2ac   : > { %v1927_v23 = vpop.f32.mrb[0].mxu1  ;;  %v1105_v12 = vpop.f32.mrb[1].mxu0 }
 0x2ad   : > { %v1169_v13 = vpop.f32.mrb[1].mxu1  ;;  %v1912_v14 = vpop.f32.mrb[2].mxu0 }
 0x2ae   : > { %v1928_v15 = vpop.f32.mrb[2].mxu1  ;;  %v1670_v16 = vpack.c.bf16 %v1912_v14, %v1911_v11  ;;  %v1108_v18 = vpop.f32.mrb[3].mxu0 }
 0x2af   : > { %v1710_v17 = vpack.c.bf16 %v1928_v15, %v1927_v23  ;;  %v1172_v19 = vpop.f32.mrb[3].mxu1  ;;  %v1665_v20 = vpack.c.bf16 %v1108_v18, %v1105_v12 }
 0x2b0   : > { %v1705_v21 = vpack.c.bf16 %v1172_v19, %v1169_v13  ;;  %1742 = vst [vmem:[%s2666_s13 + $0x8] sm:$0xff] %v1670_v16  }
 0x2b1   : > { %1750 = vst [vmem:[%s2666_s13 + $0x48] sm:$0xff] %v1710_v17   ;;  %1666 = vst [vmem:[%s2666_s13] sm:$0xff] %v1665_v20  }
 0x2b2   : > { %1749 = vst [vmem:[%s2666_s13 + $0x40] sm:$0xff] %v1705_v21  }
 0x2b3   : > { %v1915_v22 = vpop.f32.mrb[4].mxu0 }
 0x2b4   : > { %v1931_v24 = vpop.f32.mrb[4].mxu1  ;;  %v1121_v25 = vpop.f32.mrb[5].mxu0 }
 0x2b5   : > { %v1185_v26 = vpop.f32.mrb[5].mxu1  ;;  %v1916_v27 = vpop.f32.mrb[6].mxu0 }
 0x2b6   : > { %v1932_v28 = vpop.f32.mrb[6].mxu1  ;;  %v1680_v29 = vpack.c.bf16 %v1916_v27, %v1915_v22  ;;  %v1124_v31 = vpop.f32.mrb[7].mxu0 }
 0x2b7   : > { %v1720_v30 = vpack.c.bf16 %v1932_v28, %v1931_v24  ;;  %v1188_v32 = vpop.f32.mrb[7].mxu1  ;;  %v1675_v33 = vpack.c.bf16 %v1124_v31, %v1121_v25 }
 0x2b8   : > { %v1715_v34 = vpack.c.bf16 %v1188_v32, %v1185_v26  ;;  %1744 = vst [vmem:[%s2666_s13 + $0x18] sm:$0xff] %v1680_v29  }
 0x2b9   : > { %1752 = vst [vmem:[%s2666_s13 + $0x58] sm:$0xff] %v1720_v30   ;;  %1743 = vst [vmem:[%s2666_s13 + $0x10] sm:$0xff] %v1675_v33  }
 0x2ba   : > { %1751 = vst [vmem:[%s2666_s13 + $0x50] sm:$0xff] %v1715_v34  }
 0x2bb   : > { %v1919_v35 = vpop.f32.mrb[8].mxu0 }
 0x2bc   : > { %v1935_v36 = vpop.f32.mrb[8].mxu1  ;;  %v1137_v37 = vpop.f32.mrb[9].mxu0 }
 0x2bd   : > { %v1201_v38 = vpop.f32.mrb[9].mxu1  ;;  %v1920_v39 = vpop.f32.mrb[10].mxu0 }
 0x2be   : > { %v1936_v40 = vpop.f32.mrb[10].mxu1  ;;  %v1690_v41 = vpack.c.bf16 %v1920_v39, %v1919_v35  ;;  %v1140_v43 = vpop.f32.mrb[11].mxu0 }
 0x2bf   : > { %v1730_v42 = vpack.c.bf16 %v1936_v40, %v1935_v36  ;;  %v1204_v44 = vpop.f32.mrb[11].mxu1  ;;  %v1685_v45 = vpack.c.bf16 %v1140_v43, %v1137_v37 }
 0x2c0   : > { %v1725_v46 = vpack.c.bf16 %v1204_v44, %v1201_v38  ;;  %1746 = vst [vmem:[%s2666_s13 + $0x28] sm:$0xff] %v1690_v41  }
 0x2c1   : > { %1754 = vst [vmem:[%s2666_s13 + $0x68] sm:$0xff] %v1730_v42   ;;  %1745 = vst [vmem:[%s2666_s13 + $0x20] sm:$0xff] %v1685_v45  }
 0x2c2   : > { %1753 = vst [vmem:[%s2666_s13 + $0x60] sm:$0xff] %v1725_v46  }
 0x2c3   : > { %v1923_v47 = vpop.f32.mrb[12].mxu0 }
 0x2c4   : > { %v1939_v48 = vpop.f32.mrb[12].mxu1  ;;  %v1153_v49 = vpop.f32.mrb[13].mxu0 }
 0x2c5   : > { %v1217_v50 = vpop.f32.mrb[13].mxu1  ;;  %v1924_v51 = vpop.f32.mrb[14].mxu0 }
 0x2c6   : > { %v1940_v52 = vpop.f32.mrb[14].mxu1  ;;  %v1700_v53 = vpack.c.bf16 %v1924_v51, %v1923_v47  ;;  %v1156_v55 = vpop.f32.mrb[15].mxu0 }
 0x2c7   : > { %v1740_v54 = vpack.c.bf16 %v1940_v52, %v1939_v48  ;;  %v1220_v56 = vpop.f32.mrb[15].mxu1  ;;  %v1695_v57 = vpack.c.bf16 %v1156_v55, %v1153_v49 }
 0x2c8   : > { %v1735_v58 = vpack.c.bf16 %v1220_v56, %v1217_v50  ;;  %1748 = vst [vmem:[%s2666_s13 + $0x38] sm:$0xff] %v1700_v53  }
 0x2c9   : > { %1756 = vst [vmem:[%s2666_s13 + $0x78] sm:$0xff] %v1740_v54   ;;  %1747 = vst [vmem:[%s2666_s13 + $0x30] sm:$0xff] %v1695_v57  }
 0x2ca   : > { %1755 = vst [vmem:[%s2666_s13 + $0x70] sm:$0xff] %v1735_v58  }
 0x2cb PF: > { %s1661_s21 = sshll.u32 %s2376_s22, 11  ;;  %s2884_s27 = sld [smem:[#allocation20_spill]] }
 0x2cc   : > { %s1406_s1 = sshll.u32 %s2666_s13, 4  ;;  %s2785_s18 = scalar_lea.sflag [#allocation5], %s259_s3  ;;  %s2781_s1 = int_to_ptr.vmem [resolvable:$true] %s1406_s1 }
 0x2cd   : > { %s2262_s25 = scalar_lea.vmem %s2781_s1, 2048  ;;  %p2885_p9 = scmp.ne.s32.totalorder %s2871_s7, 0 }
 0x2ce   : > { %p2263_p6 = scmp.ne.s32.totalorder %s2781_s1, %s2262_s25  ;;  %s2399_s22 = smov [#allocation9]  }
 0x2cf   : > { %s2266_s28 = sshll.u32 %s2399_s22, 4  ;;  %s2267_s28 = int_to_ptr.vmem [resolvable:$false] %s2266_s28 }
 0x2d0   : > { %p2264_p10 = pnand %p2263_p6, %p2885_p9  ;;  %s2268_s14 = scalar_lea.vmem %s2267_s28, 4096 }
 0x2d1   : > { %s2778_s5 = scalar_lea.hbm %s2884_s27, %s1661_s21  ;;  %p2269_p12 = scmp.lt.s32.totalorder %s2781_s1, %s2267_s28 }
 0x2d2   : > { %p2265_p5 = pneg %p2264_p10  ;;  %p2270_p11 = scmp.lt.s32.totalorder %s2268_s14, %s2262_s25 }
 0x2d4   : > { %p2271_p1 = por %p2270_p11, %p2269_p12 }
 0x2d6   : > { %p2272_p8 = pnand %p2271_p1, %p2265_p5 }
 0x2d8   : > { %2275 = shalt.err (!%p2272_p8)
}
 0x2d9   : > { %s2276_s3 = scalar_lea.hbm %s2778_s5, 2048  ;;  %s2280_s29 = scalar_lea.hbm %s2884_s27, 4096 }
 0x2da   : > { %p2277_p4 = scmp.ne.s32.totalorder %s2778_s5, %s2276_s3  ;;  %p2281_p2 = scmp.lt.u32.totalorder %s2778_s5, %s2884_s27 }
 0x2db   : > { %p2282_p0 = scmp.lt.u32.totalorder %s2280_s29, %s2276_s3  ;;  %p2284_p6 = scmp.lt.u32.totalorder %s2276_s3, %s2778_s5 }
 0x2dc   : > { %p2278_p3 = pnand %p2277_p4, %p2885_p9 }
 0x2dd   : > { %p2283_p7 = por %p2282_p0, %p2281_p2 }
 0x2de   : > { %p2279_p13 = pneg %p2278_p3 }
 0x2df   : > { %p2285_p10 = por %p2284_p6, %p2283_p7 }
 0x2e1   : > { %p2286_p5 = pnand %p2285_p10, %p2279_p13 }
 0x2e3   : > { %2289 = shalt.err (!%p2286_p5)
}
 0x2e4   : > { %s2400_s12 = smov 64   ;;  %s2401_s26 = smov 4  }
 0x2e5   : > { %1983 = dma.vmem_to_hbm [thread:$0]  (%p2885_p9), %s2781_s1, 2048, %s2778_s5, %s2785_s18, %s2400_s12, %s2400_s12, %s2401_s26  }
 0x2e6 PF: > { %s2886_s11 = sld [smem:[#allocation15_spill]]  ;;  %s2887_s21 = sld [smem:[#allocation13_spill]] }
 0x2e7   : > { %s2888_s4 = sld [smem:[#allocation16_spill]] }
 0x2ec   : > { %p2005_p12 = scmp.ge.s32.totalorder %s2886_s11, 2  ;;  %s1421_s15 = sand.u32 1, %s2887_s21  }
 0x2ed   : > { %p2889_p11 = scmp.ne.s32.totalorder %s2888_s4, 0  ;;  %s1422_s25 = scalar_lea.sflag [#allocation5], %s1421_s15 }
 0x2ef   : > { %p1997_p1 = pnand %p2005_p12, %p2889_p11 }
 0x2f1   : > { %2343 = dma.done.wait (!%p1997_p1), %s1422_s25, 2048  }
 0x2f2   : > { %2345 = vsyncadd (!%p1997_p1), %s1422_s25, 4294965248  ;;  %s21_s25 = sadd.s32 1, %s2886_s11   ;;  %s2890_s21 = sld [smem:[#allocation14_spill]] }
 0x2f3   : > { %p18_p8 = scmp.ge.s32.totalorder %s21_s25, 6   ;;  %s2891_s7 = sld [smem:[#allocation17_spill]] }
 0x2f4   : > { %s2892_s15 = smov %s2352_s16  ;;  %s2893_s16 = smov %s2356_s17 }
 0x2f5   : > { %s2894_s17 = smov %s2613_s23  ;;  %s2895_s18 = smov %s2364_s19 }
 0x2f6   : > { %s2896_s19 = smov %s2368_s20  ;;  %s2897_s20 = smov %s2618_s10 }
 0x2f7   : > { %s2898_s22 = smov %s2384_s24  ;;  %s2900_s24 = smov %s2906_s8 }
 0x2f8   :  { %20 = sbr.rel (!%p18_p8) target bundleno = 14 (0xe), region = 98 }
 0x2f9   : > { %s2899_s23 = smov %s2891_s7 }
 0x2ff   :  { %1427 = vsyncpa [#allocation4], 1 }
 0x300   :  { %1429 = vsyncpa [#allocation4 + $0x1], 1 }
 0x301   :  { %1430 = vsyncpa [#allocation7], 1 }
 0x302   :  { %1431 = vsyncpa [#allocation5], 1 }
 0x303   :  { %1433 = vsyncpa [#allocation5 + $0x1], 1 }

</bundles_post_ra>
